<compile_context>
chip_gen: v7x
topology: tpu7x:2x2x1
jax: 0.10.0
libtpu: 0.0.40
codegen_flags: <defaults>
</compile_context>

<pallas_src>
import functools

import jax
import jax.numpy as jnp
import numpy as np
from jax import lax
from jax.experimental import pallas as pl
from jax.experimental.pallas import tpu as pltpu

# ----------------------------- model configuration -----------------------------
INPUT_SIZE = 12                      # prod(observation_shape), observation_shape=(12,)
OBS_DIM = INPUT_SIZE + 3             # observation vector length (extra force xyz)
HIDDEN_SIZES = (32, 32)              # small hidden layers (default would be [64, 64])
N_ACTIONS = 8
SUB_INDICES = ([0, 1, 2, 3],         # non-contact (free) sub-space
               [3, 4, 5, 6, 7])      # contact sub-space

_NEG = -1e30                         # exp(-1e30) == 0.0 exactly in f32


def _init_mlp_params(key, in_size, hidden_sizes, out_size):
    """Deterministic Linear-layer params: W [in, out], b [1, out]."""
    sizes = [in_size] + list(hidden_sizes) + [out_size]
    params = []
    for i in range(len(sizes) - 1):
        key, kw = jax.random.split(key)
        w = (jax.random.normal(kw, (sizes[i], sizes[i + 1]), dtype=jnp.float32)
             / jnp.sqrt(jnp.float32(sizes[i])))
        b = jnp.zeros((1, sizes[i + 1]), dtype=jnp.float32)
        params += [w, b]
    return params


# ----------------------------------- kernel ------------------------------------
def _ppo_fused_kernel(n_actions,
                      x_ref, m_ref,
                      w1_ref, b1_ref, w2_ref, b2_ref, w3_ref, b3_ref,
                      out_ref):
    """x: [T, in], m: [T, 1] (1.0 -> free branch), weights packed (see wrapper).

    z = [free_logits(0:A) | v rep (A:2A) | con_logits(2A:3A) | v rep (3A:4A)]
    out = [pi(0:A) | v rep (A:2A)]
    """
    half = 2 * n_actions

    x = x_ref[...]
    h = jnp.tanh(jnp.dot(x, w1_ref[...], preferred_element_type=jnp.float32)
                 + b1_ref[...])
    h = jnp.tanh(jnp.dot(h, w2_ref[...], preferred_element_type=jnp.float32)
                 + b2_ref[...])
    z = jnp.dot(h, w3_ref[...], preferred_element_type=jnp.float32) + b3_ref[...]

    sel = m_ref[...] > 0.5                                  # [T, 1] bool
    zz = jnp.where(sel, z[:, :half], z[:, half:2 * half])   # [T, 2A]

    col = lax.broadcasted_iota(jnp.int32, zz.shape, 1)
    is_logit = col < n_actions                              # lanes 0:A -> logits

    masked = jnp.where(is_logit, zz, _NEG)                  # protect value lanes
    lm = jnp.max(masked, axis=-1, keepdims=True)
    e = jnp.exp(masked - lm)                                # value / non-member lanes -> 0.0
    s = jnp.sum(e, axis=-1, keepdims=True)
    rinv = pl.reciprocal(s, approx=True)                    # EUP slot

    out_ref[...] = jnp.where(is_logit, e * rinv, zz)        # [pi | v replicated]


# ------------------------------ parameter packing -------------------------------
def _pack_params(pi_free_params, pi_con_params, v_params, sub_indices, n_actions):
    fw1, fb1, fw2, fb2, fw3, fb3 = pi_free_params
    cw1, cb1, cw2, cb2, cw3, cb3 = pi_con_params
    vw1, vb1, vw2, vb2, vw3, vb3 = v_params
    h2 = fw2.shape[1]

    # Static one-hot scatter matrices [|sub_k|, A] and membership masks.
    s_free_np = np.zeros((len(sub_indices[0]), n_actions), np.float32)
    for r, c in enumerate(sub_indices[0]):
        s_free_np[r, c] = 1.0
    s_con_np = np.zeros((len(sub_indices[1]), n_actions), np.float32)
    for r, c in enumerate(sub_indices[1]):
        s_con_np[r, c] = 1.0
    s_free = jnp.asarray(s_free_np)
    s_con = jnp.asarray(s_con_np)
    mem_free = jnp.asarray(s_free_np.sum(0))      # 1.0 for member action columns
    mem_con = jnp.asarray(s_con_np.sum(0))

    # Layer 1: concat; Layer 2: block-diagonal.
    w1p = jnp.concatenate([fw1, cw1, vw1], axis=1)
    b1p = jnp.concatenate([fb1, cb1, vb1], axis=1)
    w2p = jax.scipy.linalg.block_diag(fw2, cw2, vw2)
    b2p = jnp.concatenate([fb2, cb2, vb2], axis=1)

    # Layer 3: block-diagonal + scatter fold + masked-softmax bias fold.
    out_w = 4 * n_actions
    w3p = jnp.zeros((3 * h2, out_w), jnp.float32)
    w3p = w3p.at[0:h2, 0:n_actions].set(fw3 @ s_free)
    w3p = w3p.at[h2:2 * h2, 2 * n_actions:3 * n_actions].set(cw3 @ s_con)
    v_rep = jnp.tile(vw3, (1, n_actions))
    w3p = w3p.at[2 * h2:3 * h2, n_actions:2 * n_actions].set(v_rep)
    w3p = w3p.at[2 * h2:3 * h2, 3 * n_actions:4 * n_actions].set(v_rep)

    b3p = jnp.zeros((1, out_w), jnp.float32)
    b3p = b3p.at[0, 0:n_actions].set((fb3 @ s_free)[0] + _NEG * (1.0 - mem_free))
    b3p = b3p.at[0, 2 * n_actions:3 * n_actions].set(
        (cb3 @ s_con)[0] + _NEG * (1.0 - mem_con))
    vb = jnp.tile(vb3[0], (n_actions,))
    b3p = b3p.at[0, n_actions:2 * n_actions].set(vb)
    b3p = b3p.at[0, 3 * n_actions:4 * n_actions].set(vb)
    return w1p, b1p, w2p, b2p, w3p, b3p


# ----------------------------------- wrapper ------------------------------------
def ppo_structured_insertion_forward(observation, pi_free_params, pi_con_params,
                                     v_params, sub_indices, n_actions, input_size,
                                     tile_rows=512):
    """observation: [..., D] with D >= input_size + 3. Returns (pi, v) with the
    same leading dims as PyTorch's restore_leading_dims (obs_ndim = 1)."""
    lead_shape = observation.shape[:-1]
    d = observation.shape[-1]
    obs_flat = observation.reshape(-1, d).astype(jnp.float32)
    n_rows = obs_flat.shape[0]

    # Precompute the branch mask (all(|force| <= 0.5)) in the fused XLA wrapper.
    x = obs_flat[:, :input_size]
    frc = obs_flat[:, input_size:input_size + 3]
    mask_f = jnp.all(jnp.abs(frc) <= 0.5, axis=-1, keepdims=True).astype(jnp.float32)

    w1p, b1p, w2p, b2p, w3p, b3p = _pack_params(
        pi_free_params, pi_con_params, v_params, sub_indices, n_actions)

    def _round_up(a, b):
        return (a + b - 1) // b * b

    tile = tile_rows if n_rows > tile_rows else _round_up(max(n_rows, 1), 8)
    n_pad = _round_up(n_rows, tile)
    if n_pad != n_rows:
        pad = n_pad - n_rows
        x = jnp.pad(x, ((0, pad), (0, 0)))
        mask_f = jnp.pad(mask_f, ((0, pad), (0, 0)))

    out_w = 2 * n_actions
    grid = (n_pad // tile,)

    def _resident(arr):
        return pl.BlockSpec(arr.shape, lambda i: (0, 0))

    h1p = w1p.shape[1]
    h2p = w2p.shape[1]
    wbytes = 4 * int(sum(a.size for a in (w1p, b1p, w2p, b2p, w3p, b3p)))
    cost = pl.CostEstimate(
        flops=2 * n_pad * (input_size * h1p + h1p * h2p + h2p * 4 * n_actions),
        transcendentals=n_pad * (h1p + h2p + out_w),
        bytes_accessed=4 * n_pad * (input_size + 1 + out_w) + wbytes)

    out = pl.pallas_call(
        functools.partial(_ppo_fused_kernel, n_actions),
        out_shape=jax.ShapeDtypeStruct((n_pad, out_w), jnp.float32),
        grid=grid,
        in_specs=[
            pl.BlockSpec((tile, input_size), lambda i: (i, 0)),   # x tile
            pl.BlockSpec((tile, 1), lambda i: (i, 0)),            # branch mask tile
            _resident(w1p), _resident(b1p),
            _resident(w2p), _resident(b2p),
            _resident(w3p), _resident(b3p),
        ],
        out_specs=pl.BlockSpec((tile, out_w), lambda i: (i, 0)),
        compiler_params=pltpu.CompilerParams(
            dimension_semantics=("parallel",),
            vmem_limit_bytes=32 * 1024 * 1024),
        cost_estimate=cost,
    )(x, mask_f, w1p, b1p, w2p, b2p, w3p, b3p)

    pi = out[:n_rows, :n_actions].reshape(lead_shape + (n_actions,))
    v = out[:n_rows, n_actions].reshape(lead_shape)
    return pi, v


# ------------------------------- pure-JAX reference -----------------------------
def _reference(observation, pf, pc, pv, sub_indices, n_actions, input_size):
    lead_shape = observation.shape[:-1]
    obs = observation.reshape(-1, observation.shape[-1])
    x = obs[:, :input_size]
    frc = obs[:, input_size:input_size + 3]

    def mlp(xx, p):
        w1, b1, w2, b2, w3, b3 = p
        h = jnp.tanh(xx @ w1 + b1)
        h = jnp.tanh(h @ w2 + b2)
        return h @ w3 + b3

    p_free = jax.nn.softmax(mlp(x, pf), axis=-1)
    p_con = jax.nn.softmax(mlp(x, pc), axis=-1)
    v = mlp(x, pv)[:, 0]
    mask = jnp.all(jnp.abs(frc) <= 0.5, axis=-1)
    pi = jnp.zeros((obs.shape[0], n_actions), jnp.float32)
    pi_free = pi.at[:, jnp.array(sub_indices[0])].set(p_free)
    pi_con = pi.at[:, jnp.array(sub_indices[1])].set(p_con)
    pi = jnp.where(mask[:, None], pi_free, pi_con)
    return pi.reshape(lead_shape + (n_actions,)), v.reshape(lead_shape)


# ------------------------------------- main -------------------------------------
if __name__ == "__main__":
    key = jax.random.PRNGKey(0)
    k_obs, k_obs2, k_f, k_c, k_v = jax.random.split(key, 5)

    # Deterministic parameters (synthetic, not loaded from checkpoint).
    pi_free_params = _init_mlp_params(k_f, INPUT_SIZE, HIDDEN_SIZES, len(SUB_INDICES[0]))
    pi_con_params = _init_mlp_params(k_c, INPUT_SIZE, HIDDEN_SIZES, len(SUB_INDICES[1]))
    v_params = _init_mlp_params(k_v, INPUT_SIZE, HIDDEN_SIZES, 1)

    def run_and_check(obs, expect_shape):
        pi, v = ppo_structured_insertion_forward(
            obs, pi_free_params, pi_con_params, v_params,
            SUB_INDICES, N_ACTIONS, INPUT_SIZE)
        jax.block_until_ready((pi, v))
        pi_ref, v_ref = _reference(obs, pi_free_params, pi_con_params, v_params,
                                   SUB_INDICES, N_ACTIONS, INPUT_SIZE)
        assert pi.shape == expect_shape + (N_ACTIONS,) and v.shape == expect_shape
        np.testing.assert_allclose(np.asarray(pi), np.asarray(pi_ref),
                                   atol=2e-3, rtol=2e-3)
        np.testing.assert_allclose(np.asarray(v), np.asarray(v_ref),
                                   atol=2e-3, rtol=2e-3)
        # Non-member actions of the selected sub-space must be exactly zero.
        mask = np.asarray(jnp.all(
            jnp.abs(obs.reshape(-1, OBS_DIM)[:, INPUT_SIZE:INPUT_SIZE + 3]) <= 0.5,
            axis=-1))
        pi_flat = np.asarray(pi).reshape(-1, N_ACTIONS)
        non_free = [a for a in range(N_ACTIONS) if a not in SUB_INDICES[0]]
        non_con = [a for a in range(N_ACTIONS) if a not in SUB_INDICES[1]]
        assert np.all(pi_flat[mask][:, non_free] == 0.0)
        assert np.all(pi_flat[~mask][:, non_con] == 0.0)

    # Small case [T, B] = [2, 4]; force in [-1, 1] so both branches are exercised.
    T, B = 2, 4
    obs_small = jax.random.uniform(
        k_obs, (T, B, OBS_DIM), dtype=jnp.float32, minval=-1.0, maxval=1.0)
    run_and_check(obs_small, (T, B))

    # Larger case to exercise the row grid + padding path (grid > 1, N % tile != 0).
    T2, B2 = 50, 13
    obs_large = jax.random.uniform(
        k_obs2, (T2, B2, OBS_DIM), dtype=jnp.float32, minval=-1.0, maxval=1.0)
    run_and_check(obs_large, (T2, B2))

    # TODO(synk): optional bf16 input cast for bandwidth-poor v5e left out to keep
    # f32 exactness; flip obs/weights to bf16 at the wrapper boundary if desired.
    print("KERNEL_OK")
</pallas_src>

<mosaic_0001>
module attributes {stable_mosaic.version = 11 : i64} {
  func.func @_ppo_fused_kernel(%arg0: i32, %arg1: memref<8x12xf32, #tpu.memory_space<vmem>>, %arg2: memref<8x1xf32, #tpu.memory_space<vmem>>, %arg3: memref<12x96xf32, #tpu.memory_space<vmem>>, %arg4: memref<1x96xf32, #tpu.memory_space<vmem>>, %arg5: memref<96x96xf32, #tpu.memory_space<vmem>>, %arg6: memref<1x96xf32, #tpu.memory_space<vmem>>, %arg7: memref<96x32xf32, #tpu.memory_space<vmem>>, %arg8: memref<1x32xf32, #tpu.memory_space<vmem>>, %arg9: memref<8x16xf32, #tpu.memory_space<vmem>>) attributes {dimension_semantics = [#tpu.dimension_semantics<parallel>], iteration_bounds = array<i64: 1>, scalar_prefetch = 0 : i64, scratch_operands = 0 : i64, tpu.core_type = #tpu.core_type<tc>, window_params = [{transform_indices = @transform_0, window_bounds = array<i64: 8, 12>}, {transform_indices = @transform_1, window_bounds = array<i64: 8, 1>}, {pipeline_mode = #tpu.pipeline_mode<synchronous>, transform_indices = @transform_2, window_bounds = array<i64: 12, 96>}, {pipeline_mode = #tpu.pipeline_mode<synchronous>, transform_indices = @transform_3, window_bounds = array<i64: 1, 96>}, {pipeline_mode = #tpu.pipeline_mode<synchronous>, transform_indices = @transform_4, window_bounds = array<i64: 96, 96>}, {pipeline_mode = #tpu.pipeline_mode<synchronous>, transform_indices = @transform_5, window_bounds = array<i64: 1, 96>}, {pipeline_mode = #tpu.pipeline_mode<synchronous>, transform_indices = @transform_6, window_bounds = array<i64: 96, 32>}, {pipeline_mode = #tpu.pipeline_mode<synchronous>, transform_indices = @transform_7, window_bounds = array<i64: 1, 32>}, {transform_indices = @transform_8, window_bounds = array<i64: 8, 16>}]} {
    %c0 = arith.constant 0 : index
    %c0_0 = arith.constant 0 : index
    %0 = vector.load %arg1[%c0, %c0_0] : memref<8x12xf32, #tpu.memory_space<vmem>>, vector<8x12xf32>
    %c0_1 = arith.constant 0 : index
    %c0_2 = arith.constant 0 : index
    %1 = vector.load %arg3[%c0_1, %c0_2] : memref<12x96xf32, #tpu.memory_space<vmem>>, vector<12x96xf32>
    %cst = arith.constant dense<0.000000e+00> : vector<8x96xf32>
    %2 = tpu.matmul %0, %1, %cst {dimension_numbers = #tpu.dot_dimension_numbers<[1], [0], [0], [1], [0, 0, 1, 1], [], []>} : vector<8x12xf32>, vector<12x96xf32>, vector<8x96xf32> -> vector<8x96xf32>
    %c0_3 = arith.constant 0 : index
    %c0_4 = arith.constant 0 : index
    %3 = vector.load %arg4[%c0_3, %c0_4] : memref<1x96xf32, #tpu.memory_space<vmem>>, vector<1x96xf32>
    %4 = vector.broadcast %3 : vector<1x96xf32> to vector<8x96xf32>
    %5 = arith.addf %2, %4 : vector<8x96xf32>
    %6 = math.tanh %5 : vector<8x96xf32>
    %c0_5 = arith.constant 0 : index
    %c0_6 = arith.constant 0 : index
    %7 = vector.load %arg5[%c0_5, %c0_6] : memref<96x96xf32, #tpu.memory_space<vmem>>, vector<96x96xf32>
    %cst_7 = arith.constant dense<0.000000e+00> : vector<8x96xf32>
    %8 = tpu.matmul %6, %7, %cst_7 {dimension_numbers = #tpu.dot_dimension_numbers<[1], [0], [0], [1], [0, 0, 1, 1], [], []>} : vector<8x96xf32>, vector<96x96xf32>, vector<8x96xf32> -> vector<8x96xf32>
    %c0_8 = arith.constant 0 : index
    %c0_9 = arith.constant 0 : index
    %9 = vector.load %arg6[%c0_8, %c0_9] : memref<1x96xf32, #tpu.memory_space<vmem>>, vector<1x96xf32>
    %10 = vector.broadcast %9 : vector<1x96xf32> to vector<8x96xf32>
    %11 = arith.addf %8, %10 : vector<8x96xf32>
    %12 = math.tanh %11 : vector<8x96xf32>
    %c0_10 = arith.constant 0 : index
    %c0_11 = arith.constant 0 : index
    %13 = vector.load %arg7[%c0_10, %c0_11] : memref<96x32xf32, #tpu.memory_space<vmem>>, vector<96x32xf32>
    %cst_12 = arith.constant dense<0.000000e+00> : vector<8x32xf32>
    %14 = tpu.matmul %12, %13, %cst_12 {dimension_numbers = #tpu.dot_dimension_numbers<[1], [0], [0], [1], [0, 0, 1, 1], [], []>} : vector<8x96xf32>, vector<96x32xf32>, vector<8x32xf32> -> vector<8x32xf32>
    %c0_13 = arith.constant 0 : index
    %c0_14 = arith.constant 0 : index
    %15 = vector.load %arg8[%c0_13, %c0_14] : memref<1x32xf32, #tpu.memory_space<vmem>>, vector<1x32xf32>
    %16 = vector.broadcast %15 : vector<1x32xf32> to vector<8x32xf32>
    %17 = arith.addf %14, %16 : vector<8x32xf32>
    %c0_15 = arith.constant 0 : index
    %c0_16 = arith.constant 0 : index
    %18 = vector.load %arg2[%c0_15, %c0_16] : memref<8x1xf32, #tpu.memory_space<vmem>>, vector<8x1xf32>
    %cst_17 = arith.constant 5.000000e-01 : f32
    %19 = vector.broadcast %cst_17 : f32 to vector<8x1xf32>
    %20 = arith.cmpf ogt, %18, %19 : vector<8x1xf32>
    %21 = vector.extract_strided_slice %17 {offsets = [0, 0], sizes = [8, 16], strides = [1, 1]} : vector<8x32xf32> to vector<8x16xf32>
    %22 = vector.extract_strided_slice %17 {offsets = [0, 16], sizes = [8, 16], strides = [1, 1]} : vector<8x32xf32> to vector<8x16xf32>
    %23 = vector.shape_cast %20 : vector<8x1xi1> to vector<8x1xi1>
    %24 = vector.broadcast %23 : vector<8x1xi1> to vector<8x16xi1>
    %25 = arith.select %24, %21, %22 : vector<8x16xi1>, vector<8x16xf32>
    %26 = tpu.iota {dimensions = array<i32: 1>} : vector<8x16xi32>
    %c8_i32 = arith.constant 8 : i32
    %27 = vector.broadcast %c8_i32 : i32 to vector<8x16xi32>
    %28 = arith.cmpi slt, %26, %27 : vector<8x16xi32>
    %cst_18 = arith.constant -1.000000e+30 : f32
    %29 = vector.broadcast %cst_18 : f32 to vector<8x16xf32>
    %30 = arith.select %28, %25, %29 : vector<8x16xi1>, vector<8x16xf32>
    %cst_19 = arith.constant dense<0xFF800000> : vector<8xf32>
    %31 = vector.multi_reduction <maximumf>, %30, %cst_19 [1] : vector<8x16xf32> to vector<8xf32>
    %32 = vector.shape_cast %31 : vector<8xf32> to vector<8x1xf32>
    %33 = vector.broadcast %32 : vector<8x1xf32> to vector<8x16xf32>
    %34 = arith.subf %30, %33 : vector<8x16xf32>
    %35 = math.exp %34 : vector<8x16xf32>
    %cst_20 = arith.constant dense<0.000000e+00> : vector<8xf32>
    %36 = vector.multi_reduction <add>, %35, %cst_20 [1] : vector<8x16xf32> to vector<8xf32>
    %37 = vector.shape_cast %36 : vector<8xf32> to vector<8x1xf32>
    %38 = tpu.reciprocal %37 {approx = true} : vector<8x1xf32> -> vector<8x1xf32>
    %39 = vector.broadcast %38 : vector<8x1xf32> to vector<8x16xf32>
    %40 = arith.mulf %35, %39 : vector<8x16xf32>
    %41 = arith.select %28, %40, %25 : vector<8x16xi1>, vector<8x16xf32>
    %c0_21 = arith.constant 0 : index
    %c0_22 = arith.constant 0 : index
    %42 = vector.load %arg9[%c0_21, %c0_22] : memref<8x16xf32, #tpu.memory_space<vmem>>, vector<8x16xf32>
    tpu.vector_store %arg9[%c0_21, %c0_22], %41 {strides = array<i32>} : memref<8x16xf32, #tpu.memory_space<vmem>>, vector<8x16xf32>,
    return
  }
  func.func @transform_0(%arg0: i32) -> (i32, i32) {
    %c0_i32 = arith.constant 0 : i32
    %c0_i32_0 = arith.constant 0 : i32
    return %arg0, %c0_i32 : i32, i32
  }
  func.func @transform_1(%arg0: i32) -> (i32, i32) {
    %c0_i32 = arith.constant 0 : i32
    %c0_i32_0 = arith.constant 0 : i32
    return %arg0, %c0_i32 : i32, i32
  }
  func.func @transform_2(%arg0: i32) -> (i32, i32) {
    %c0_i32 = arith.constant 0 : i32
    %c0_i32_0 = arith.constant 0 : i32
    %c0_i32_1 = arith.constant 0 : i32
    return %c0_i32, %c0_i32_0 : i32, i32
  }
  func.func @transform_3(%arg0: i32) -> (i32, i32) {
    %c0_i32 = arith.constant 0 : i32
    %c0_i32_0 = arith.constant 0 : i32
    %c0_i32_1 = arith.constant 0 : i32
    return %c0_i32, %c0_i32_0 : i32, i32
  }
  func.func @transform_4(%arg0: i32) -> (i32, i32) {
    %c0_i32 = arith.constant 0 : i32
    %c0_i32_0 = arith.constant 0 : i32
    %c0_i32_1 = arith.constant 0 : i32
    return %c0_i32, %c0_i32_0 : i32, i32
  }
  func.func @transform_5(%arg0: i32) -> (i32, i32) {
    %c0_i32 = arith.constant 0 : i32
    %c0_i32_0 = arith.constant 0 : i32
    %c0_i32_1 = arith.constant 0 : i32
    return %c0_i32, %c0_i32_0 : i32, i32
  }
  func.func @transform_6(%arg0: i32) -> (i32, i32) {
    %c0_i32 = arith.constant 0 : i32
    %c0_i32_0 = arith.constant 0 : i32
    %c0_i32_1 = arith.constant 0 : i32
    return %c0_i32, %c0_i32_0 : i32, i32
  }
  func.func @transform_7(%arg0: i32) -> (i32, i32) {
    %c0_i32 = arith.constant 0 : i32
    %c0_i32_0 = arith.constant 0 : i32
    %c0_i32_1 = arith.constant 0 : i32
    return %c0_i32, %c0_i32_0 : i32, i32
  }
  func.func @transform_8(%arg0: i32) -> (i32, i32) {
    %c0_i32 = arith.constant 0 : i32
    %c0_i32_0 = arith.constant 0 : i32
    return %arg0, %c0_i32 : i32, i32
  }
}

</mosaic_0001>

<bundles_post_ra>
// kernel: tpu_custom_call.1
= control target key start
LH: loop header
LB: loop body
LE: loop exit
PB: predicated region body
PF: predicated region fallthrough
CT: control target
= control target key end

     0   :  { %vm44_vm0 = vcmask 1043456   ;;  %v526_v2 = vmov 0.0|0.0   ;;  %vm527_vm1 = vmmov 1   ;;  %vm528_vm3 = vmmov 0   ;;  %s706_s0 = inlined_call_operand.vmem [shape: f32[8,12], index: 0, kind: input, shape index: {}]   ;;  %s707_s1 = inlined_call_operand.vmem [shape: f32[8,1], index: 1, kind: input, shape index: {}]   ;;  %s708_s2 = inlined_call_operand.vmem [shape: f32[12,96], index: 2, kind: input, shape index: {}]   ;;  %s709_s3 = inlined_call_operand.vmem [shape: f32[1,96], index: 3, kind: input, shape index: {}]   ;;  %s710_s4 = inlined_call_operand.vmem [shape: f32[96,96], index: 4, kind: input, shape index: {}]   ;;  %s711_s5 = inlined_call_operand.vmem [shape: f32[1,96], index: 5, kind: input, shape index: {}]   ;;  %s712_s6 = inlined_call_operand.vmem [shape: f32[96,32], index: 6, kind: input, shape index: {}]   ;;  %s713_s7 = inlined_call_operand.vmem [shape: f32[1,32], index: 7, kind: input, shape index: {}]   ;;  %s714_s8 = inlined_call_operand.hbm [shape: f32[8,16], index: 8, kind: output, shape index: {}]  }
   0x1   :  { %v31_v0 = vld [vmem:[%s708_s2] sm:$0xff]  ;;  %v32_v1 = vld [vmem:[%s708_s2 + $0x8] sm:$0xf]  ;;  %446 = vmatprep.subr.bf16.mxu0 %v526_v2  ;;  %vm448_vm2 = vmpackc.low %vm44_vm0, %vm527_vm1  ;;  %450 = vmatprep.subr.bf16.mxu1 %v526_v2  ;;  %v529_v5 = vmov 0.0   ;;  %vm40_vm4 = vcmask 97280  }
   0x2   :  { %v447_v3 = vpack.c.bf16 %v32_v1, %v31_v0  ;;  %v119_v4 = vld [vmem:[%s710_s4] sm:$0xff]  ;;  %389 = vmatprep.mubr.msk.f32.mxu0 %vm528_vm3, %v529_v5  ;;  %v120_v6 = vld [vmem:[%s710_s4 + $0x8] sm:$0xff]  ;;  %v121_v7 = vld [vmem:[%s710_s4 + $0x10] sm:$0xff]  ;;  %416 = vmatprep.mubr.msk.f32.mxu1 %vm528_vm3, %v529_v5 }
   0x3   :  { %v122_v8 = vld [vmem:[%s710_s4 + $0x18] sm:$0xff]  ;;  %v30_v9 = vld [vmem:[%s706_s0] sm:$0xff]  ;;  %v451_v10 = vpack.c.bf16 %v120_v6, %v119_v4 }
   0x4   :  { %449 = vmatpush3.bf16.msk.msra.mxu0 %vm448_vm2, %v447_v3 }
   0x5   :  { %468 = vmatprep.subr.bf16.mxu0 %v526_v2 }
   0x6   :  { %13 = vsyncpa [#allocation3], 0  ;;  %452 = vmatpush3.bf16.msra.mxu1 %v451_v10  ;;  %v454_v11 = vpack.c.bf16 %v122_v8, %v121_v7  ;;  %v123_v12 = vld [vmem:[%s710_s4 + $0x20] sm:$0xff]  ;;  %v124_v13 = vld [vmem:[%s710_s4 + $0x28] sm:$0xff]  ;;  %vm138_vm5 = vcmask 785408   ;;  %v530_v48 = vmov 0   ;;  %v317_v59 = vlaneseq }
   0x7   :  { %390 = vmatmul.mubr.msk.f32.vlgmr.msra.gmra.mrb[0].mxu0 %vm40_vm4, %v30_v9  ;;  %453 = vmatprep.subr.bf16.mxu1 %v526_v2  ;;  %v457_v14 = vpack.c.bf16 %v124_v13, %v123_v12  ;;  %v125_v15 = vld [vmem:[%s710_s4 + $0x30] sm:$0xff]  ;;  %v126_v16 = vld [vmem:[%s710_s4 + $0x38] sm:$0xff]  ;;  %v127_v18 = vld [vmem:[%s710_s4 + $0x40] sm:$0xff]  ;;  %vm321_vm9 = vcmask 130048  }
   0x8   :  { %443 = vmatprep.mubr.msk.f32.mxu0 %vm528_vm3, %v529_v5  ;;  %v460_v17 = vpack.c.bf16 %v126_v16, %v125_v15  ;;  %v128_v19 = vld [vmem:[%s710_s4 + $0x48] sm:$0xff]  ;;  %v129_v21 = vld [vmem:[%s710_s4 + $0x50] sm:$0xff]  ;;  %v130_v22 = vld [vmem:[%s710_s4 + $0x58] sm:$0xff]  ;;  %493 = vset.pattern.permute.xlu0 %v530_v48  ;;  %v318_v61 = vand.u32 127, %v317_v59 }
   0x9   :  { %v463_v20 = vpack.c.bf16 %v128_v19, %v127_v18  ;;  %v466_v23 = vpack.c.bf16 %v130_v22, %v129_v21  ;;  %v213_v24 = vld [vmem:[%s712_s6] sm:$0xff]  ;;  %v214_v25 = vld [vmem:[%s712_s6 + $0x8] sm:$0xff]  ;;  %v215_v26 = vld [vmem:[%s712_s6 + $0x10] sm:$0xff] }
   0xa   :  { %455 = vmatpush3.bf16.msra.mxu1 %v454_v11  ;;  %v469_v27 = vpack.c.bf16 %v214_v25, %v213_v24  ;;  %v216_v28 = vld [vmem:[%s712_s6 + $0x18] sm:$0xff]  ;;  %v217_v30 = vld [vmem:[%s712_s6 + $0x20] sm:$0xff]  ;;  %v218_v31 = vld [vmem:[%s712_s6 + $0x28] sm:$0xff]  ;;  %vm319_vm7 = vcmp.lt.s32.totalorder %v318_v61, 8 }
   0xb   :  { %456 = vmatprep.subr.bf16.mxu1 %v526_v2  ;;  %v472_v29 = vpack.c.bf16 %v216_v28, %v215_v26  ;;  %v475_v32 = vpack.c.bf16 %v218_v31, %v217_v30  ;;  %v349_v33 = vld [vmem:[%s709_s3] ss:$0 sm:$0xff]  ;;  %v219_v38 = vld [vmem:[%s712_s6 + $0x30] sm:$0xff]  ;;  %v220_v39 = vld [vmem:[%s712_s6 + $0x38] sm:$0xff] }
   0xc   :  { %470 = vmatpush3.bf16.msra.mxu0 %v469_v27  ;;  %v478_v40 = vpack.c.bf16 %v220_v39, %v219_v38  ;;  %v221_v41 = vld [vmem:[%s712_s6 + $0x40] sm:$0xff]  ;;  %v222_v42 = vld [vmem:[%s712_s6 + $0x48] sm:$0xff]  ;;  %v223_v44 = vld [vmem:[%s712_s6 + $0x50] sm:$0xff] }
   0xd   :  { %471 = vmatprep.subr.bf16.mxu0 %v526_v2  ;;  %v481_v43 = vpack.c.bf16 %v222_v42, %v221_v41  ;;  %v224_v45 = vld [vmem:[%s712_s6 + $0x58] sm:$0xff]  ;;  %v305_v47 = vld [vmem:[%s707_s1] sm:$0xff]  ;;  %s531_s1 = smov 112  }
   0xe   :  { %458 = vmatpush3.bf16.msra.mxu1 %v457_v14  ;;  %v484_v46 = vpack.c.bf16 %v224_v45, %v223_v44  ;;  %vm306_vm6 = vcmp.gt.f32.partialorder %v305_v47, 0.5  ;;  %v352_v50 = vld [vmem:[%s711_s5] ss:$0 sm:$0xff]  ;;  %s532_s5 = smov [#allocation2]  }
   0xf   :  { %459 = vmatprep.subr.bf16.mxu1 %v526_v2  ;;  %v307_v49 = vsel %vm306_vm6, 1, %v530_v48  ;;  %v354_v55 = vld [vmem:[%s713_s7] ss:$0 sm:$0xff]  ;;  %s341_s7 = sshll.u32 %s532_s5, 4  ;;  %s342_s7 = int_to_ptr.vmem [resolvable:$true] %s341_s7 }
  0x10   :  { %473 = vmatpush3.bf16.msra.mxu0 %v472_v29  ;;  %309 = vperm.xlu0 %493, %v307_v49   ;;  %s502_s15 = scalar_lea.vmem %s342_s7, 128  ;;  %p507_p1 = scmp.lt.s32.totalorder %s342_s7, %s342_s7 }
  0x11   :  { %474 = vmatprep.subr.bf16.mxu0 %v526_v2  ;;  %p503_p0 = scmp.ne.s32.totalorder %s342_s7, %s502_s15  ;;  %p508_p2 = scmp.lt.s32.totalorder %s502_s15, %s502_s15 }
  0x12   :  { %461 = vmatpush3.bf16.msra.mxu1 %v460_v17 }
  0x13   :  { %462 = vmatprep.subr.bf16.mxu1 %v526_v2  ;;  %p509_p3 = por %p508_p2, %p507_p1 }
  0x14   :  { %476 = vmatpush3.bf16.msra.mxu0 %v475_v32 }
  0x15   :  { %477 = vmatprep.subr.bf16.mxu0 %v526_v2  ;;  %p510_p4 = pnand %p509_p3, %p503_p0 }
  0x16   :  { %464 = vmatpush3.bf16.msra.mxu1 %v463_v20 }
  0x17   :  { %465 = vmatprep.subr.bf16.mxu1 %v526_v2 }
  0x18   :  { %479 = vmatpush3.bf16.msra.mxu0 %v478_v40 }
  0x19   :  { %480 = vmatprep.subr.bf16.mxu0 %v526_v2 }
  0x1a   :  { %467 = vmatpush3.bf16.msra.mxu1 %v466_v23 }
  0x1c   :  { %482 = vmatpush3.bf16.msra.mxu0 %v481_v43 }
  0x1d   :  { %483 = vmatprep.subr.bf16.mxu0 %v526_v2 }
  0x20   :  { %485 = vmatpush3.bf16.msra.mxu0 %v484_v46 }
  0x8f   :  { %v310_v60 = vpop.permute.xlu0 %309 }
  0x90   :  { %vm311_vm8 = vcmp.eq.s32.totalorder %v310_v60, 1 }
  0xda   :  { %v114_v34 = vpop.f32.mrb[0].mxu0 }
  0xdb   :  { %v115_v35 = vadd.f32 %v349_v33, %v114_v34  ;;  %v391_v36 = vpop.f32.mrb[1].mxu0 }
  0xdd   :  { %494 = vtanh.f32 %v115_v35 }
  0xe7   :  { %v495_v37 = vpop.eup %494 }
  0xe8   :  { %417 = vmatmul.mubr.msk.f32.vlgmr.msra.gmra.mrb[0].mxu1 %vm138_vm5, %v495_v37 }
 0x1bb   :  { %v208_v51 = vpop.f32.mrb[0].mxu1 }
 0x1bc   :  { %v209_v52 = vadd.f32 %v352_v50, %v208_v51  ;;  %v418_v53 = vpop.f32.mrb[1].mxu1 }
 0x1be   :  { %496 = vtanh.f32 %v209_v52 }
 0x1c8   :  { %v497_v54 = vpop.eup %496 }
 0x1c9   :  { %444 = vmatmul.mubr.msk.f32.vlgmr.msra.gmra.mrb[2].mxu0 %vm138_vm5, %v497_v54 }
 0x29c   :  { %v301_v56 = vpop.f32.mrb[2].mxu0 }
 0x29d   :  { %v302_v57 = vadd.f32 %v354_v55, %v301_v56  ;;  %v445_v58 = vpop.f32.mrb[3].mxu0 }
 0x29f   :  { %313 = vrot.lane.b32.xlu0 %v302_v57, %s531_s1 }
 0x311   :  { %v314_v62 = vpop.permute.xlu0 %313 }
 0x312   :  { %v316_v63 = vsel %vm311_vm8, %v302_v57, %v314_v62 }
 0x313   :  { %v320_v0 = vsel %vm319_vm7, %v316_v63, -1e+30 }
 0x314   :  { %v322_v1 = vsel %vm321_vm9, %v320_v0, -inf }
 0x315   :  { %323 = vmax.xlane.f32.xlu1 %v322_v1 }
 0x3a2   :  { %v324_v2 = vpop.xlane.xlu1 %323 }
 0x3a3   :  { %v325_v3 = vsub.f32 %v320_v0, %v324_v2 }
 0x3a5   :  { %v326_v4 = vmul.f32 1.442695, %v325_v3 }
 0x3a7   :  { %498 = vpow2.f32 %v326_v4 }
 0x3b1   :  { %v499_v5 = vpop.eup %498 }
 0x3b2   :  { %v328_v6 = vsel %vm321_vm9, %v499_v5, 0.0 }
 0x3b3   :  { %329 = vadd.xlane.f32.xlu1 %v328_v6 }
 0x440   :  { %v330_v7 = vpop.xlane.xlu1 %329 }
 0x441   :  { %500 = vrcp.f32 %v330_v7 }
 0x44b   :  { %v501_v8 = vpop.eup %500 }
 0x44c   :  { %v332_v9 = vmul.f32 %v501_v8, %v499_v5 }
 0x44e   :  { %v333_v10 = vsel %vm319_vm7, %v332_v9, %v316_v63 }
 0x44f   :  { %334 = vst.msk [vmem:[#allocation2] sm:$0xff] %vm321_vm9, %v333_v10 }
 0x450   :  { %513 = shalt.err (!%p510_p4)
}
 0x451   :  { %s514_s17 = scalar_lea.hbm %s714_s8, 128 }
 0x452   :  { %p515_p5 = scmp.ne.s32.totalorder %s714_s8, %s514_s17  ;;  %p518_p6 = scmp.lt.u32.totalorder %s514_s17, %s714_s8 }
 0x454   :  { %p520_p7 = pnand %p518_p6, %p515_p5 }
 0x456   :  { %523 = shalt.err (!%p520_p7)
}
 0x457   :  { %344 = dma.vmem_to_hbm [thread:$0]  %s342_s7, 128, %s714_s8, [#allocation3]  }
 0x458   :  { %524 = dma.done.wait [#allocation3], 128  }
 0x459   :  { %525 = vsyncadd [#allocation3], 4294967168 }
 0x45a   :  { %348 = vsyncpa [#allocation3], 1 }

</bundles_post_ra>
